<compile_context>
chip_gen: v5e
topology: v5e:2x2
jax: 0.10.0
libtpu: 0.0.40
codegen_flags: <defaults>
</compile_context>

<pallas_src>
import functools

import jax
import jax.numpy as jnp
from jax import lax
from jax.experimental import pallas as pl
from jax.experimental.pallas import tpu as pltpu

_D_PAD = 8      # coord axis padded to 8 lanes (3 coords + 2 norm lanes + zeros)
_BIG = 1e30     # padded scan columns dot to -_BIG for real template rows


def _round_up(x, m):
    return ((x + m - 1) // m) * m


def _partial_chamfer_kernel(t_ref, s_ref, o_ref, max_ref, *, threshold, tn):
    """One (template-tile i, scan-tile j) grid step.

    t_ref:   (tm, 8)   augmented template tile        [t, -0.5||t||^2, -1, 0..]
    s_ref:   (8, tn)   augmented, pre-transposed scan [s;  1; 0.5||s||^2; 0..]
    o_ref:   (tm, 1)   per-template-row masked squared distance
                       (written only at the last scan tile)
    max_ref: (tm, 128) lane-dense running row-max of dot = -0.5 * d
    """
    j = pl.program_id(1)

    # reset the running max at the start of every scan sweep
    @pl.when(j == 0)
    def _():
        max_ref[...] = jnp.full(max_ref.shape, -jnp.inf, dtype=max_ref.dtype)

    t = t_ref[...]                                      # (tm, 8)
    m = max_ref[...]                                    # (tm, 128), in vregs

    # Consume the scan tile in 128-wide strips: one (tm,8)x(8,128) MXU matmul
    # and one elementwise max per strip.  The (tm, tn) slab never round-trips
    # VMEM and there is no per-step cross-lane reduce.
    for g in range(tn // 128):
        s_strip = s_ref[:, g * 128:(g + 1) * 128]       # (8, 128)
        dots = lax.dot_general(t, s_strip, (((1,), (0,)), ((), ())),
                               preferred_element_type=jnp.float32)  # (tm, 128)
        m = jnp.maximum(m, dots)
    max_ref[...] = m

    # after the last scan tile: finalize per-template-row masked distances
    @pl.when(j == pl.num_programs(1) - 1)
    def _():
        row_max = jnp.max(max_ref[...], axis=-1, keepdims=True)     # (tm, 1)
        d = jnp.maximum(-2.0 * row_max, 0.0)            # squared nearest dist
        o_ref[...] = jnp.where(d < threshold, d, 0.0)


def partial_data_loss(scan_vertices, template_vertices, partial_data_threshold,
                      *, tm=256, tn=4096):
    """scan_vertices: (N, 3), template_vertices: (M, 3) -> scalar float32."""
    scan = jnp.asarray(scan_vertices, jnp.float32)
    template = jnp.asarray(template_vertices, jnp.float32)
    N, d = scan.shape
    M, d2 = template.shape
    assert d == d2 and d + 2 <= _D_PAD

    # shrink tiles for small clouds (template tile: multiple of 8 sublanes,
    # scan tile: multiple of 128 lanes)
    tm = min(tm, _round_up(M, 8))
    tn = min(tn, _round_up(N, 128))
    Mp = pl.cdiv(M, tm) * tm
    Np = pl.cdiv(N, tn) * tn

    # augmented template: [t, -0.5*||t||^2, -1, 0...]; padded rows stay all-zero
    tmpl_aug = jnp.zeros((Mp, _D_PAD), jnp.float32)
    tmpl_aug = tmpl_aug.at[:M, :d].set(template)
    tmpl_aug = tmpl_aug.at[:M, d].set(-0.5 * jnp.sum(template * template, -1))
    tmpl_aug = tmpl_aug.at[:M, d + 1].set(-1.0)

    # augmented scan, pre-transposed to (8, Np): [s; 1; 0.5*||s||^2; 0...].
    # Padded columns carry _BIG in the norm lane so they never win the max.
    scan_aug = jnp.zeros((_D_PAD, Np), jnp.float32)
    scan_aug = scan_aug.at[d + 1, :].set(_BIG)
    scan_aug = scan_aug.at[:d, :N].set(scan.T)
    scan_aug = scan_aug.at[d, :N].set(1.0)
    scan_aug = scan_aug.at[d + 1, :N].set(0.5 * jnp.sum(scan * scan, -1))

    kernel = functools.partial(_partial_chamfer_kernel,
                               threshold=float(partial_data_threshold), tn=tn)

    per_row = pl.pallas_call(
        kernel,
        out_shape=jax.ShapeDtypeStruct((Mp, 1), jnp.float32),
        grid_spec=pltpu.PrefetchScalarGridSpec(
            num_scalar_prefetch=0,
            grid=(Mp // tm, Np // tn),
            in_specs=[
                pl.BlockSpec((tm, _D_PAD), lambda i, j: (i, 0)),   # template
                pl.BlockSpec((_D_PAD, tn), lambda i, j: (0, j)),   # scan^T
            ],
            out_specs=pl.BlockSpec((tm, 1), lambda i, j: (i, 0)),
            scratch_shapes=[pltpu.VMEM((tm, 128), jnp.float32)],   # running max
        ),
        compiler_params=pltpu.CompilerParams(
            # template axis: independent per-i outputs -> megacore-shardable
            # on v7x; scan axis: reduction (last, "arbitrary").
            dimension_semantics=("parallel", "arbitrary")),
    )(tmpl_aug, scan_aug)

    # padded template rows contribute exactly 0; cheap final reduction in JAX
    return jnp.sum(per_row)


def _reference(scan, template, threshold):
    diff = template[:, None, :] - scan[None, :, :]
    d = jnp.sum(diff * diff, axis=-1)
    dmin = jnp.min(d, axis=1)
    return jnp.sum(jnp.where(dmin < threshold, dmin, 0.0))


if __name__ == "__main__":
    key = jax.random.PRNGKey(0)
    k1, k2 = jax.random.split(key)
    # small synthetic point clouds: scan N x 3, template M x 3
    scan_vertices = jax.random.uniform(k1, (300, 3), jnp.float32)
    template_vertices = jax.random.uniform(k2, (72, 3), jnp.float32)
    partial_data_threshold = 0.05

    # small tile overrides so this tiny example still exercises a multi-step
    # grid (3 template tiles x 3 scan tiles) including padded rows/columns;
    # production calls use the larger defaults (tm=256, tn=4096).
    loss = partial_data_loss(scan_vertices, template_vertices,
                             partial_data_threshold, tm=32, tn=128)
    loss = jax.block_until_ready(loss)

    ref = _reference(scan_vertices, template_vertices, partial_data_threshold)
    assert jnp.allclose(loss, ref, rtol=1e-4, atol=1e-5), (loss, ref)

    print("KERNEL_OK")
</pallas_src>

<mosaic_0001>
module attributes {stable_mosaic.version = 11 : i64} {
  func.func @_partial_chamfer_kernel(%arg0: i32, %arg1: i32, %arg2: memref<32x8xf32, #tpu.memory_space<vmem>>, %arg3: memref<8x128xf32, #tpu.memory_space<vmem>>, %arg4: memref<32x1xf32, #tpu.memory_space<vmem>>, %arg5: memref<32x128xf32, #tpu.memory_space<vmem>>) attributes {dimension_semantics = [#tpu.dimension_semantics<parallel>, #tpu.dimension_semantics<arbitrary>], iteration_bounds = array<i64: 3, 3>, scalar_prefetch = 0 : i64, scratch_operands = 1 : i64, tpu.core_type = #tpu.core_type<tc>, window_params = [{transform_indices = @transform_0, window_bounds = array<i64: 32, 8>}, {transform_indices = @transform_1, window_bounds = array<i64: 8, 128>}, {transform_indices = @transform_2, window_bounds = array<i64: 32, 1>}]} {
    %c0_i32 = arith.constant 0 : i32
    %0 = arith.cmpi eq, %arg1, %c0_i32 : i32
    %1 = arith.extui %0 : i1 to i32
    %c0_i32_0 = arith.constant 0 : i32
    %2 = arith.cmpi ne, %1, %c0_i32_0 : i32
    scf.if %2 {
      %cst_9 = arith.constant 0xFF800000 : f32
      %12 = vector.broadcast %cst_9 : f32 to vector<32x128xf32>
      %c0_10 = arith.constant 0 : index
      %c0_11 = arith.constant 0 : index
      %13 = vector.load %arg5[%c0_10, %c0_11] : memref<32x128xf32, #tpu.memory_space<vmem>>, vector<32x128xf32>
      tpu.vector_store %arg5[%c0_10, %c0_11], %12 {strides = array<i32>} : memref<32x128xf32, #tpu.memory_space<vmem>>, vector<32x128xf32>,
    } else {
    }
    %c0 = arith.constant 0 : index
    %c0_1 = arith.constant 0 : index
    %3 = vector.load %arg2[%c0, %c0_1] : memref<32x8xf32, #tpu.memory_space<vmem>>, vector<32x8xf32>
    %c0_2 = arith.constant 0 : index
    %c0_3 = arith.constant 0 : index
    %4 = vector.load %arg5[%c0_2, %c0_3] : memref<32x128xf32, #tpu.memory_space<vmem>>, vector<32x128xf32>
    %c0_4 = arith.constant 0 : index
    %c0_5 = arith.constant 0 : index
    %5 = vector.load %arg3[%c0_4, %c0_5] : memref<8x128xf32, #tpu.memory_space<vmem>>, vector<8x128xf32>
    %cst = arith.constant dense<0.000000e+00> : vector<32x128xf32>
    %6 = tpu.matmul %3, %5, %cst {dimension_numbers = #tpu.dot_dimension_numbers<[1], [0], [0], [1], [0, 0, 1, 1], [], []>} : vector<32x8xf32>, vector<8x128xf32>, vector<32x128xf32> -> vector<32x128xf32>
    %7 = arith.maximumf %4, %6 : vector<32x128xf32>
    %c0_6 = arith.constant 0 : index
    %c0_7 = arith.constant 0 : index
    %8 = vector.load %arg5[%c0_6, %c0_7] : memref<32x128xf32, #tpu.memory_space<vmem>>, vector<32x128xf32>
    tpu.vector_store %arg5[%c0_6, %c0_7], %7 {strides = array<i32>} : memref<32x128xf32, #tpu.memory_space<vmem>>, vector<32x128xf32>,
    %c2_i32 = arith.constant 2 : i32
    %9 = arith.cmpi eq, %arg1, %c2_i32 : i32
    %10 = arith.extui %9 : i1 to i32
    %c0_i32_8 = arith.constant 0 : i32
    %11 = arith.cmpi ne, %10, %c0_i32_8 : i32
    scf.if %11 {
      %c0_9 = arith.constant 0 : index
      %c0_10 = arith.constant 0 : index
      %12 = vector.load %arg5[%c0_9, %c0_10] : memref<32x128xf32, #tpu.memory_space<vmem>>, vector<32x128xf32>
      %cst_11 = arith.constant dense<0xFF800000> : vector<32xf32>
      %13 = vector.multi_reduction <maximumf>, %12, %cst_11 [1] : vector<32x128xf32> to vector<32xf32>
      %14 = vector.shape_cast %13 : vector<32xf32> to vector<32x1xf32>
      %cst_12 = arith.constant -2.000000e+00 : f32
      %15 = vector.broadcast %cst_12 : f32 to vector<32x1xf32>
      %16 = arith.mulf %15, %14 : vector<32x1xf32>
      %cst_13 = arith.constant 0.000000e+00 : f32
      %17 = vector.broadcast %cst_13 : f32 to vector<32x1xf32>
      %18 = arith.maximumf %16, %17 : vector<32x1xf32>
      %cst_14 = arith.constant 5.000000e-02 : f32
      %19 = vector.broadcast %cst_14 : f32 to vector<32x1xf32>
      %20 = arith.cmpf olt, %18, %19 : vector<32x1xf32>
      %cst_15 = arith.constant 0.000000e+00 : f32
      %21 = vector.broadcast %cst_15 : f32 to vector<32x1xf32>
      %22 = arith.select %20, %18, %21 : vector<32x1xi1>, vector<32x1xf32>
      %c0_16 = arith.constant 0 : index
      %c0_17 = arith.constant 0 : index
      %23 = vector.load %arg4[%c0_16, %c0_17] : memref<32x1xf32, #tpu.memory_space<vmem>>, vector<32x1xf32>
      tpu.vector_store %arg4[%c0_16, %c0_17], %22 {strides = array<i32>} : memref<32x1xf32, #tpu.memory_space<vmem>>, vector<32x1xf32>,
    } else {
    }
    return
  }
  func.func @transform_0(%arg0: i32, %arg1: i32) -> (i32, i32) {
    %c0_i32 = arith.constant 0 : i32
    %c0_i32_0 = arith.constant 0 : i32
    return %arg0, %c0_i32 : i32, i32
  }
  func.func @transform_1(%arg0: i32, %arg1: i32) -> (i32, i32) {
    %c0_i32 = arith.constant 0 : i32
    %c0_i32_0 = arith.constant 0 : i32
    return %c0_i32, %arg1 : i32, i32
  }
  func.func @transform_2(%arg0: i32, %arg1: i32) -> (i32, i32) {
    %c0_i32 = arith.constant 0 : i32
    %c0_i32_0 = arith.constant 0 : i32
    return %arg0, %c0_i32 : i32, i32
  }
}

</mosaic_0001>

<bundles_post_ra>
// kernel: tpu_custom_call.1
= control target key start
LH: loop header
LB: loop body
LE: loop exit
PB: predicated region body
PF: predicated region fallthrough
CT: control target
= control target key end

     0   :  { %s478_s9 = smov 0   ;;  %s480_s10 = smov 0   ;;  %s548_s0 = inlined_call_operand.vmem [shape: f32[96,8], index: 0, kind: input, shape index: {}]   ;;  %s549_s1 = inlined_call_operand.vmem [shape: f32[8,384], index: 1, kind: input, shape index: {}]   ;;  %s550_s2 = inlined_call_operand.vmem [shape: f32[96,1], index: 2, kind: output, shape index: {}]  }
   0x1   :  { %s482_s11 = smov 0   ;;  %s484_s12 = smov 0  }
   0x2   :  { %s486_s13 = smov 0  }
   0x3 LB: > { %s21_s14 = sadd.s32 1, %s452_s11  ;;  %s24_s15 = sadd.s32 1, %s456_s12  ;;  %s460_s13 = sphi %s486_s13, %s12_s13   ;;  %s456_s12 = sphi %s484_s12, %s554_s12   ;;  %s452_s11 = sphi %s482_s11, %s553_s11   ;;  %s448_s10 = sphi %s480_s10, %s552_s10   ;;  %s444_s9 = sphi %s478_s9, %s551_s9  }
   0x4   : > { %p22_p0 = scmp.ge.s32.totalorder %s21_s14, 3  ;;  %p364_p1 = scmp.ge.s32.totalorder %s460_s13, 1 }
   0x5   : > { %p134_p2 = scmp.lt.s32.totalorder %s460_s13, 10 }
   0x6   : > { %s556_s14 = smov (%p22_p0, %s21_s14), 0  ;;  %s558_s15 = smov (!%p22_p0, %s24_s15), %s456_s12 }
   0x7   : > { %p135_p3 = pnand %p364_p1, %p134_p2  ;;  %p26_p4 = scmp.ge.s32.totalorder %s558_s15, 3 }
   0x8   : > { %s365_s16 = sshll.u32 (!%p135_p3), %s448_s10, 2  ;;  %p166_p5 = scmp.lt.s32.totalorder (!%p135_p3), %s444_s9, 2 }
   0x9   : > { %s560_s15 = smov (%p26_p4, %s558_s15), 0  ;;  %138 = sbr.rel (%p135_p3) target bundleno = 300 (0x12c), region = 28 }
   0xa   : > { %p161_p6 = scmp.lt.s32.totalorder (!%p135_p3), %s365_s16, 11  ;;  %p370_p7 = scmp.ne.s32.totalorder (!%p135_p3), %s444_s9, 0 }
   0xe   : > { %s167_s17 = scalar_select %p166_p5, %s444_s9, 2 }
   0xf   : > { %s562_s16 = smov (!%p161_p6, %s365_s16), 11  ;;  %179 = sbr.rel (%p370_p7) target bundleno = 25 (0x19), region = 32 }
  0x10   : > { %s367_s18 = sshll.u32 %s167_s17, 3  ;;  %s366_s19 = sshll.u32 %s562_s16, 3 }
  0x11   : > { %s169_s22 = scalar_lea.vmem %s549_s1, %s367_s18  ;;  %s164_s25 = scalar_lea.vmem %s548_s0, %s366_s19 }
  0x12   : > { %s521_s28 = scalar_lea.vmem %s550_s2, %s366_s19 }
  0x14   : > { %v462_v0 = vmov -inf  }
  0x15   : > { %180 = vst [vmem:[#allocation2 + $0x10] sm:$0xff] %v462_v0 }
  0x16   : > { %181 = vst [vmem:[#allocation2] sm:$0xff] %v462_v0 }
  0x17   : > { %182 = vst [vmem:[#allocation2 + $0x18] sm:$0xff] %v462_v0 }
  0x18   : > { %183 = vst [vmem:[#allocation2 + $0x8] sm:$0xff] %v462_v0 }
  0x19 PF: > { %v192_v1 = vld [vmem:[%s169_s22] sm:$0xff]  ;;  %v186_v2 = vld [vmem:[%s164_s25 + $0x10] sm:$0xff]  ;;  %vm193_vm0 = vcmask 64512   ;;  %v187_v3 = vld [vmem:[%s164_s25 + $0x18] sm:$0xff]  ;;  %p375_p8 = scmp.ne.s32.totalorder %s444_s9, 2 }
  0x1a   : > { %379 = vmatpush.msra.mxu2 %v192_v1  ;;  %380 = vmatpush.msra.mxu3 %v192_v1  ;;  %v184_v4 = vld [vmem:[%s164_s25] sm:$0xff]  ;;  %v185_v5 = vld [vmem:[%s164_s25 + $0x8] sm:$0xff] }
  0x1b   : > { %373 = vmatmul.msk.f32.vlgmr.msra.gmra.mxu2 %vm193_vm0, %v186_v2  ;;  %374 = vmatmul.msk.f32.vlgmr.msra.gmra.mxu3 %vm193_vm0, %v187_v3 }
  0x1c   : > { %221 = vmatpush.msra.mxu0 %v192_v1  ;;  %378 = vmatpush.msra.mxu1 %v192_v1  ;;  %v188_v6 = vld [vmem:[#allocation2 + $0x10] sm:$0xff] }
  0x1d   : > { %371 = vmatmul.msk.f32.vlgmr.msra.gmra.mxu0 %vm193_vm0, %v184_v4  ;;  %372 = vmatmul.msk.f32.vlgmr.msra.gmra.mxu1 %vm193_vm0, %v185_v5  ;;  %v189_v7 = vld [vmem:[#allocation2] sm:$0xff] }
  0x1e   : > { %v190_v12 = vld [vmem:[#allocation2 + $0x18] sm:$0xff] }
  0x1f   : > { %v191_v13 = vld [vmem:[#allocation2 + $0x8] sm:$0xff] }
  0x9a   : > { %v223_v8 = vpop.f32.mrf.mxu0  ;;  %v226_v9 = vpop.f32.mrf.mxu1 }
  0x9b   : > { %v235_v10 = vmax.f32 %v188_v6, %v223_v8  ;;  %v236_v11 = vmax.f32 %v189_v7, %v226_v9 }
  0x9d   : > { %239 = vst [vmem:[#allocation2 + $0x10] sm:$0xff] %v235_v10 }
  0x9e   : > { %240 = vst [vmem:[#allocation2] sm:$0xff] %v236_v11  ;;  %v229_v14 = vpop.f32.mrf.mxu2  ;;  %v232_v15 = vpop.f32.mrf.mxu3  ;;  %246 = sbr.rel (%p375_p8) target bundleno = 300 (0x12c), region = 36 }
  0x9f   : > { %v237_v16 = vmax.f32 %v190_v12, %v229_v14  ;;  %v238_v17 = vmax.f32 %v191_v13, %v232_v15 }
  0xa1   : > { %241 = vst [vmem:[#allocation2 + $0x18] sm:$0xff] %v237_v16 }
  0xa2   : > { %242 = vst [vmem:[#allocation2 + $0x8] sm:$0xff] %v238_v17 }
  0xa3   : > { %vm275_vm1 = vcmask 7168  }
  0xa4   : > { %v247_v19 = vld [vmem:[#allocation2 + $0x10] sm:$0xff] }
  0xa5   : > { %251 = vmax.xlane.f32.xlu0 %v247_v19  ;;  %v248_v21 = vld [vmem:[#allocation2] sm:$0xff] }
  0xa8   : > { %v249_v18 = vld [vmem:[#allocation2 + $0x18] sm:$0xff] }
  0xa9   : > { %255 = vmax.xlane.f32.xlu1 %v249_v18  ;;  %v250_v20 = vld [vmem:[#allocation2 + $0x8] sm:$0xff] }
  0xad   : > { %253 = vmax.xlane.f32.xlu0 %v248_v21 }
  0xb1   : > { %257 = vmax.xlane.f32.xlu1 %v250_v20 }
 0x118   : > { %v252_v23 = vpop.xlane.xlu0 %251 }
 0x119   : > { %v259_v25 = vmul.f32 -2.0, %v252_v23 }
 0x11b   : > { %v263_v27 = vmax.f32 %v259_v25, 0.0 }
 0x11c   : > { %v256_v22 = vpop.xlane.xlu1 %255 }
 0x11d   : > { %v261_v24 = vmul.f32 -2.0, %v256_v22  ;;  %vm267_vm3 = vcmp.lt.f32.partialorder %v263_v27, 0.05 }
 0x11e   : > { %v271_v29 = vsel %vm267_vm3, %v263_v27, 0.0 }
 0x11f   : > { %v265_v26 = vmax.f32 %v261_v24, 0.0  ;;  %276 = vst.msk [vmem:[%s521_s28] sm:$0xff] %vm275_vm1, %v271_v29 }
 0x120   : > { %v254_v31 = vpop.xlane.xlu0 %253 }
 0x121   : > { %vm269_vm2 = vcmp.lt.f32.partialorder %v265_v26, 0.05  ;;  %v260_v33 = vmul.f32 -2.0, %v254_v31 }
 0x122   : > { %v273_v28 = vsel %vm269_vm2, %v265_v26, 0.0 }
 0x123   : > { %278 = vst.msk [vmem:[%s521_s28 + $0x10] sm:$0xff] %vm275_vm1, %v273_v28  ;;  %v264_v35 = vmax.f32 %v260_v33, 0.0 }
 0x124   : > { %v258_v30 = vpop.xlane.xlu1 %257 }
 0x125   : > { %v262_v32 = vmul.f32 -2.0, %v258_v30  ;;  %vm268_vm5 = vcmp.lt.f32.partialorder %v264_v35, 0.05 }
 0x126   : > { %v272_v37 = vsel %vm268_vm5, %v264_v35, 0.0 }
 0x127   : > { %v266_v34 = vmax.f32 %v262_v32, 0.0  ;;  %277 = vst.msk [vmem:[%s521_s28 + $0x8] sm:$0xff] %vm275_vm1, %v272_v37 }
 0x129   : > { %vm270_vm4 = vcmp.lt.f32.partialorder %v266_v34, 0.05 }
 0x12a   : > { %v274_v36 = vsel %vm270_vm4, %v266_v34, 0.0 }
 0x12b   : > { %279 = vst.msk [vmem:[%s521_s28 + $0x18] sm:$0xff] %vm275_vm1, %v274_v36 }
 0x12c PF: > { %s12_s13 = sadd.s32 1, %s460_s13   ;;  %s551_s9 = smov %s452_s11 }
 0x12d   : > { %p9_p9 = scmp.ge.s32.totalorder %s12_s13, 11   ;;  %s552_s10 = smov %s456_s12 }
 0x12e   : > { %s553_s11 = smov %s556_s14  ;;  %s554_s12 = smov %s560_s15 }
 0x12f   :  { %11 = sbr.rel (!%p9_p9) target bundleno = 3 (0x3), region = 69 }

</bundles_post_ra>
